<compile_context>
chip_gen: v7x
topology: tpu7x:2x2x1
jax: 0.10.0
libtpu: 0.0.40
codegen_flags: <defaults>
</compile_context>

<pallas_src>
from typing import NamedTuple

import jax
import jax.numpy as jnp
from jax.experimental import pallas as pl
from jax.experimental.pallas import tpu as pltpu


def _round_up(x, m):
    return ((x + m - 1) // m) * m


_LANE = 128
_SUBLANE = 8
_TM_CAP = 256
_TN_CAP = 512
_VMEM_BUDGET = 40 * 1024 * 1024      # target working set (safe on v7x's 64 MiB)
_VMEM_LIMIT_CAP = 48 * 1024 * 1024   # scoped-VMEM request cap


def _working_set_bytes(tm, tn, tk, compute_itemsize):
    x_b = 2 * tm * tk * compute_itemsize        # double-buffered activation tile
    w_b = 2 * 2 * tk * tn * compute_itemsize    # double-buffered fused weight tile
    o_b = 2 * 2 * tm * tn * 4                   # two f32 output tiles (dbl-buffered)
    b_b = 2 * tn * 4                            # bias tile
    return x_b + w_b + o_b + b_b


def _plan_tiles(out_size, in_size, compute_itemsize):
    """Pick N/K tiling independent of batch size so weights can be packed once."""
    tn = min(_TN_CAP, _round_up(out_size, _LANE))
    Np = _round_up(out_size, tn)
    # v7x has 2 TensorCores: a >= 512-wide padded output axis should yield
    # at least 2 parallel blocks (no effect on v5e / v6e).
    if Np // tn == 1 and tn >= 512:
        tn = tn // 2
        Np = _round_up(out_size, tn)
    # Prefer tk == full padded K (no reduction loop); shrink only if the
    # double-buffered working set would exceed the VMEM budget.
    tk = _round_up(in_size, _LANE)
    while (_working_set_bytes(_TM_CAP, tn, tk, compute_itemsize) > _VMEM_BUDGET
           and tk > 512):
        tk = _round_up(tk // 2, _LANE)
    Kp = _round_up(in_size, tk)
    return tn, tk, Np, Kp


class FcSplitParams(NamedTuple):
    w_packed: jax.Array   # [2, Kp, Np]  (0: mean head, 1: logvar head), compute dtype
    b_mean: jax.Array     # [1, Np] float32
    in_size: int
    out_size: int
    tn: int
    tk: int


def pack_fc_split_params(w_mean, b_mean, w_logvar, *, compute_dtype=None):
    """One-time parameter packing (call at setup, NOT per forward).

    Pads + transposes both weight matrices into MXU-natural [Kp, Np] layout
    and fuses the two heads into a single [2, Kp, Np] array so the kernel
    issues one weight DMA per grid step.  Optionally stores them in bf16 for
    half the weight HBM traffic (accumulation stays f32)."""
    out_size, in_size = w_mean.shape
    if compute_dtype is None:
        compute_dtype = w_mean.dtype
    itemsize = jnp.dtype(compute_dtype).itemsize
    tn, tk, Np, Kp = _plan_tiles(out_size, in_size, itemsize)

    wp = jnp.zeros((2, Kp, Np), compute_dtype)
    wp = wp.at[0, :in_size, :out_size].set(w_mean.T.astype(compute_dtype))
    wp = wp.at[1, :in_size, :out_size].set(w_logvar.T.astype(compute_dtype))
    bp = jnp.zeros((1, Np), jnp.float32).at[0, :out_size].set(
        b_mean.astype(jnp.float32))
    return FcSplitParams(wp, bp, in_size, out_size, tn, tk)


def _fc_split_kernel(x_ref, w_ref, b_ref, mean_ref, logvar_ref):
    k = pl.program_id(2)

    @pl.when(k == 0)
    def _():
        mean_ref[...] = jnp.zeros_like(mean_ref)
        logvar_ref[...] = jnp.zeros_like(logvar_ref)

    x = x_ref[...]
    # Natural [M,K] x [K,N] MXU feed; f32 accumulation directly in the
    # k-resident f32 output blocks (no scratch accumulators).
    mean_ref[...] += jnp.dot(x, w_ref[0], preferred_element_type=jnp.float32)
    logvar_ref[...] += jnp.dot(x, w_ref[1], preferred_element_type=jnp.float32)

    # Epilogue: bias + activations applied exactly once after the K reduction.
    @pl.when(k == pl.num_programs(2) - 1)
    def _():
        pre = mean_ref[...] + b_ref[...]                     # [tm, tn] + [1, tn]
        # Numerically-stable sigmoid with a single exp.
        z = jnp.exp(-jnp.abs(pre))
        mean_ref[...] = jnp.where(pre >= 0.0, 1.0 / (1.0 + z), z / (1.0 + z))
        logvar_ref[...] = jnp.clip(logvar_ref[...], -4.5, 0.0)   # Hardtanh(-4.5, 0)


def fc_layer_split_fwd(x, params: FcSplitParams):
    """x: [..., in_size] -> (mean [..., out_size], logvar [..., out_size])."""
    orig_dtype = x.dtype
    lead_shape = x.shape[:-1]
    in_size, out_size = params.in_size, params.out_size
    assert x.shape[-1] == in_size

    x2 = x.reshape(-1, in_size)
    B = x2.shape[0]

    compute_dtype = params.w_packed.dtype
    tn, tk = params.tn, params.tk
    _, Kp, Np = params.w_packed.shape

    tm = min(_TM_CAP, _round_up(max(B, 1), _SUBLANE))
    Mp = _round_up(B, tm)

    # Only the (small) activation is padded per call; weights are pre-packed.
    if Mp == B and Kp == in_size and x2.dtype == compute_dtype:
        xp = x2
    else:
        xp = jnp.zeros((Mp, Kp), compute_dtype).at[:B, :in_size].set(
            x2.astype(compute_dtype))

    grid = (Mp // tm, Np // tn, Kp // tk)

    comp_isize = jnp.dtype(compute_dtype).itemsize
    cost = pl.CostEstimate(
        flops=2 * 2 * Mp * Np * Kp,                       # two matmuls
        transcendentals=Mp * Np,                          # sigmoid exp
        bytes_accessed=comp_isize * (Mp * Kp + 2 * Kp * Np) + 4 * (Np + 2 * Mp * Np),
    )
    ws = _working_set_bytes(tm, tn, tk, comp_isize)
    vmem_limit = int(min(_VMEM_LIMIT_CAP, max(32 * 1024 * 1024, ws + (4 << 20))))

    mean_p, logvar_p = pl.pallas_call(
        _fc_split_kernel,
        out_shape=(jax.ShapeDtypeStruct((Mp, Np), jnp.float32),
                   jax.ShapeDtypeStruct((Mp, Np), jnp.float32)),
        grid_spec=pltpu.PrefetchScalarGridSpec(
            num_scalar_prefetch=0,
            grid=grid,
            in_specs=[
                pl.BlockSpec((tm, tk), lambda i, j, k: (i, k)),        # x
                pl.BlockSpec((2, tk, tn), lambda i, j, k: (0, k, j)),  # fused W (K,N)
                pl.BlockSpec((1, tn), lambda i, j, k: (0, j)),         # b_mean
            ],
            out_specs=(
                pl.BlockSpec((tm, tn), lambda i, j, k: (i, j)),        # mean
                pl.BlockSpec((tm, tn), lambda i, j, k: (i, j)),        # logvar
            ),
        ),
        compiler_params=pltpu.CompilerParams(
            dimension_semantics=("parallel", "parallel", "arbitrary"),
            vmem_limit_bytes=vmem_limit),
        cost_estimate=cost,
    )(xp, params.w_packed, params.b_mean)

    mean = mean_p[:B, :out_size].reshape(*lead_shape, out_size)
    logvar = logvar_p[:B, :out_size].reshape(*lead_shape, out_size)
    if orig_dtype != jnp.float32:
        mean = mean.astype(orig_dtype)
        logvar = logvar.astype(orig_dtype)
    return mean, logvar


if __name__ == "__main__":
    # Small, deterministic configuration consistent with the module.
    batch = 8
    in_size = 32
    out_size = 16

    key = jax.random.PRNGKey(0)
    kx, kwm, kbm, kwl = jax.random.split(key, 4)

    x = jax.random.normal(kx, (batch, in_size), dtype=jnp.float32)
    w_mean = jax.random.normal(kwm, (out_size, in_size), dtype=jnp.float32) * 0.1
    b_mean = jax.random.normal(kbm, (out_size,), dtype=jnp.float32) * 0.1
    w_logvar = jax.random.normal(kwl, (out_size, in_size), dtype=jnp.float32) * 0.1

    # Pure-JAX reference (fc_layer_split.forward with module defaults).
    pre_mean = x @ w_mean.T + b_mean
    ref_mean = jax.nn.sigmoid(pre_mean)                        # Sigmoid
    ref_logvar = jnp.clip(x @ w_logvar.T, -4.5, 0.0)           # Hardtanh(-4.5, 0)

    # f32 compute path: pack weights once, run forward.
    params_f32 = pack_fc_split_params(w_mean, b_mean, w_logvar)
    mean, logvar = jax.block_until_ready(fc_layer_split_fwd(x, params_f32))

    assert mean.shape == (batch, out_size) and logvar.shape == (batch, out_size)
    assert jnp.allclose(mean, ref_mean, atol=1e-5, rtol=1e-5), "mean mismatch"
    assert jnp.allclose(logvar, ref_logvar, atol=1e-5, rtol=1e-5), "logvar mismatch"

    # bf16 matmul-input path (f32 accumulation): looser tolerance.
    params_bf16 = pack_fc_split_params(w_mean, b_mean, w_logvar,
                                       compute_dtype=jnp.bfloat16)
    mean16, logvar16 = jax.block_until_ready(fc_layer_split_fwd(x, params_bf16))
    assert jnp.allclose(mean16, ref_mean, atol=5e-2, rtol=5e-2), "bf16 mean mismatch"
    assert jnp.allclose(logvar16, ref_logvar, atol=5e-2, rtol=5e-2), "bf16 logvar mismatch"

    print("KERNEL_OK")
</pallas_src>

<mosaic_0001>
module attributes {stable_mosaic.version = 11 : i64} {
  func.func @_fc_split_kernel(%arg0: i32, %arg1: i32, %arg2: i32, %arg3: memref<8x128xf32, #tpu.memory_space<vmem>>, %arg4: memref<2x128x128xf32, #tpu.memory_space<vmem>>, %arg5: memref<1x128xf32, #tpu.memory_space<vmem>>, %arg6: memref<8x128xf32, #tpu.memory_space<vmem>>, %arg7: memref<8x128xf32, #tpu.memory_space<vmem>>) attributes {dimension_semantics = [#tpu.dimension_semantics<parallel>, #tpu.dimension_semantics<parallel>, #tpu.dimension_semantics<arbitrary>], iteration_bounds = array<i64: 1, 1, 1>, scalar_prefetch = 0 : i64, scratch_operands = 0 : i64, tpu.core_type = #tpu.core_type<tc>, window_params = [{transform_indices = @transform_0, window_bounds = array<i64: 8, 128>}, {transform_indices = @transform_1, window_bounds = array<i64: 2, 128, 128>}, {transform_indices = @transform_2, window_bounds = array<i64: 1, 128>}, {transform_indices = @transform_3, window_bounds = array<i64: 8, 128>}, {transform_indices = @transform_4, window_bounds = array<i64: 8, 128>}]} {
    %c0_i32 = arith.constant 0 : i32
    %0 = arith.cmpi eq, %arg2, %c0_i32 : i32
    %1 = arith.extui %0 : i1 to i32
    %c0_i32_0 = arith.constant 0 : i32
    %2 = arith.cmpi ne, %1, %c0_i32_0 : i32
    scf.if %2 {
      %cst_18 = arith.constant 0.000000e+00 : f32
      %19 = vector.broadcast %cst_18 : f32 to vector<8x128xf32>
      %c0_19 = arith.constant 0 : index
      %c0_20 = arith.constant 0 : index
      %20 = vector.load %arg6[%c0_19, %c0_20] : memref<8x128xf32, #tpu.memory_space<vmem>>, vector<8x128xf32>
      tpu.vector_store %arg6[%c0_19, %c0_20], %19 {strides = array<i32>} : memref<8x128xf32, #tpu.memory_space<vmem>>, vector<8x128xf32>,
      %cst_21 = arith.constant 0.000000e+00 : f32
      %21 = vector.broadcast %cst_21 : f32 to vector<8x128xf32>
      %c0_22 = arith.constant 0 : index
      %c0_23 = arith.constant 0 : index
      %22 = vector.load %arg7[%c0_22, %c0_23] : memref<8x128xf32, #tpu.memory_space<vmem>>, vector<8x128xf32>
      tpu.vector_store %arg7[%c0_22, %c0_23], %21 {strides = array<i32>} : memref<8x128xf32, #tpu.memory_space<vmem>>, vector<8x128xf32>,
    } else {
    }
    %c0 = arith.constant 0 : index
    %c0_1 = arith.constant 0 : index
    %3 = vector.load %arg3[%c0, %c0_1] : memref<8x128xf32, #tpu.memory_space<vmem>>, vector<8x128xf32>
    %c0_2 = arith.constant 0 : index
    %c0_3 = arith.constant 0 : index
    %4 = vector.load %arg6[%c0_2, %c0_3] : memref<8x128xf32, #tpu.memory_space<vmem>>, vector<8x128xf32>
    %c0_4 = arith.constant 0 : index
    %c0_5 = arith.constant 0 : index
    %c0_6 = arith.constant 0 : index
    %5 = vector.load %arg4[%c0_4, %c0_5, %c0_6] : memref<2x128x128xf32, #tpu.memory_space<vmem>>, vector<1x128x128xf32>
    %6 = vector.shape_cast %5 : vector<1x128x128xf32> to vector<128x128xf32>
    %cst = arith.constant dense<0.000000e+00> : vector<8x128xf32>
    %7 = tpu.matmul %3, %6, %cst {dimension_numbers = #tpu.dot_dimension_numbers<[1], [0], [0], [1], [0, 0, 1, 1], [], []>} : vector<8x128xf32>, vector<128x128xf32>, vector<8x128xf32> -> vector<8x128xf32>
    %8 = arith.addf %4, %7 : vector<8x128xf32>
    %c0_7 = arith.constant 0 : index
    %c0_8 = arith.constant 0 : index
    %9 = vector.load %arg6[%c0_7, %c0_8] : memref<8x128xf32, #tpu.memory_space<vmem>>, vector<8x128xf32>
    tpu.vector_store %arg6[%c0_7, %c0_8], %8 {strides = array<i32>} : memref<8x128xf32, #tpu.memory_space<vmem>>, vector<8x128xf32>,
    %c0_9 = arith.constant 0 : index
    %c0_10 = arith.constant 0 : index
    %10 = vector.load %arg7[%c0_9, %c0_10] : memref<8x128xf32, #tpu.memory_space<vmem>>, vector<8x128xf32>
    %c1 = arith.constant 1 : index
    %c0_11 = arith.constant 0 : index
    %c0_12 = arith.constant 0 : index
    %11 = vector.load %arg4[%c1, %c0_11, %c0_12] : memref<2x128x128xf32, #tpu.memory_space<vmem>>, vector<1x128x128xf32>
    %12 = vector.shape_cast %11 : vector<1x128x128xf32> to vector<128x128xf32>
    %cst_13 = arith.constant dense<0.000000e+00> : vector<8x128xf32>
    %13 = tpu.matmul %3, %12, %cst_13 {dimension_numbers = #tpu.dot_dimension_numbers<[1], [0], [0], [1], [0, 0, 1, 1], [], []>} : vector<8x128xf32>, vector<128x128xf32>, vector<8x128xf32> -> vector<8x128xf32>
    %14 = arith.addf %10, %13 : vector<8x128xf32>
    %c0_14 = arith.constant 0 : index
    %c0_15 = arith.constant 0 : index
    %15 = vector.load %arg7[%c0_14, %c0_15] : memref<8x128xf32, #tpu.memory_space<vmem>>, vector<8x128xf32>
    tpu.vector_store %arg7[%c0_14, %c0_15], %14 {strides = array<i32>} : memref<8x128xf32, #tpu.memory_space<vmem>>, vector<8x128xf32>,
    %c0_i32_16 = arith.constant 0 : i32
    %16 = arith.cmpi eq, %arg2, %c0_i32_16 : i32
    %17 = arith.extui %16 : i1 to i32
    %c0_i32_17 = arith.constant 0 : i32
    %18 = arith.cmpi ne, %17, %c0_i32_17 : i32
    scf.if %18 {
      %c0_18 = arith.constant 0 : index
      %c0_19 = arith.constant 0 : index
      %19 = vector.load %arg6[%c0_18, %c0_19] : memref<8x128xf32, #tpu.memory_space<vmem>>, vector<8x128xf32>
      %c0_20 = arith.constant 0 : index
      %c0_21 = arith.constant 0 : index
      %20 = vector.load %arg5[%c0_20, %c0_21] : memref<1x128xf32, #tpu.memory_space<vmem>>, vector<1x128xf32>
      %21 = vector.broadcast %20 : vector<1x128xf32> to vector<8x128xf32>
      %22 = arith.addf %19, %21 : vector<8x128xf32>
      %23 = math.absf %22 : vector<8x128xf32>
      %cst_22 = arith.constant 0.000000e+00 : f32
      %24 = vector.broadcast %cst_22 : f32 to vector<8x128xf32>
      %25 = arith.subf %24, %23 : vector<8x128xf32>
      %26 = math.exp %25 : vector<8x128xf32>
      %cst_23 = arith.constant 0.000000e+00 : f32
      %27 = vector.broadcast %cst_23 : f32 to vector<8x128xf32>
      %28 = arith.cmpf oge, %22, %27 : vector<8x128xf32>
      %cst_24 = arith.constant 1.000000e+00 : f32
      %29 = vector.broadcast %cst_24 : f32 to vector<8x128xf32>
      %30 = arith.addf %29, %26 : vector<8x128xf32>
      %cst_25 = arith.constant 1.000000e+00 : f32
      %31 = vector.broadcast %cst_25 : f32 to vector<8x128xf32>
      %32 = arith.divf %31, %30 : vector<8x128xf32>
      %cst_26 = arith.constant 1.000000e+00 : f32
      %33 = vector.broadcast %cst_26 : f32 to vector<8x128xf32>
      %34 = arith.addf %33, %26 : vector<8x128xf32>
      %35 = arith.divf %26, %34 : vector<8x128xf32>
      %36 = arith.select %28, %32, %35 : vector<8x128xi1>, vector<8x128xf32>
      %c0_27 = arith.constant 0 : index
      %c0_28 = arith.constant 0 : index
      %37 = vector.load %arg6[%c0_27, %c0_28] : memref<8x128xf32, #tpu.memory_space<vmem>>, vector<8x128xf32>
      tpu.vector_store %arg6[%c0_27, %c0_28], %36 {strides = array<i32>} : memref<8x128xf32, #tpu.memory_space<vmem>>, vector<8x128xf32>,
      %c0_29 = arith.constant 0 : index
      %c0_30 = arith.constant 0 : index
      %38 = vector.load %arg7[%c0_29, %c0_30] : memref<8x128xf32, #tpu.memory_space<vmem>>, vector<8x128xf32>
      %cst_31 = arith.constant -4.500000e+00 : f32
      %cst_32 = arith.constant 0.000000e+00 : f32
      %39 = vector.broadcast %cst_31 : f32 to vector<8x128xf32>
      %40 = arith.maximumf %39, %38 : vector<8x128xf32>
      %41 = vector.broadcast %cst_32 : f32 to vector<8x128xf32>
      %42 = arith.minimumf %41, %40 : vector<8x128xf32>
      %c0_33 = arith.constant 0 : index
      %c0_34 = arith.constant 0 : index
      %43 = vector.load %arg7[%c0_33, %c0_34] : memref<8x128xf32, #tpu.memory_space<vmem>>, vector<8x128xf32>
      tpu.vector_store %arg7[%c0_33, %c0_34], %42 {strides = array<i32>} : memref<8x128xf32, #tpu.memory_space<vmem>>, vector<8x128xf32>,
    } else {
    }
    return
  }
  func.func @transform_0(%arg0: i32, %arg1: i32, %arg2: i32) -> (i32, i32) {
    %c0_i32 = arith.constant 0 : i32
    return %arg0, %arg2 : i32, i32
  }
  func.func @transform_1(%arg0: i32, %arg1: i32, %arg2: i32) -> (i32, i32, i32) {
    %c0_i32 = arith.constant 0 : i32
    %c0_i32_0 = arith.constant 0 : i32
    return %c0_i32, %arg2, %arg1 : i32, i32, i32
  }
  func.func @transform_2(%arg0: i32, %arg1: i32, %arg2: i32) -> (i32, i32) {
    %c0_i32 = arith.constant 0 : i32
    %c0_i32_0 = arith.constant 0 : i32
    return %c0_i32, %arg1 : i32, i32
  }
  func.func @transform_3(%arg0: i32, %arg1: i32, %arg2: i32) -> (i32, i32) {
    %c0_i32 = arith.constant 0 : i32
    return %arg0, %arg1 : i32, i32
  }
  func.func @transform_4(%arg0: i32, %arg1: i32, %arg2: i32) -> (i32, i32) {
    %c0_i32 = arith.constant 0 : i32
    return %arg0, %arg1 : i32, i32
  }
}

</mosaic_0001>

<bundles_post_ra>
// kernel: tpu_custom_call.1
= control target key start
LH: loop header
LB: loop body
LE: loop exit
PB: predicated region body
PF: predicated region fallthrough
CT: control target
= control target key end

     0   :  { %10 = vsyncpa [#allocation3], 0  ;;  %s657_s0 = inlined_call_operand.hbm [shape: f32[8,128], index: 0, kind: input, shape index: {}]   ;;  %s658_s1 = inlined_call_operand.hbm [shape: f32[2,128,128], index: 1, kind: input, shape index: {}]   ;;  %s659_s2 = inlined_call_operand.vmem [shape: f32[1,128], index: 2, kind: input, shape index: {}]   ;;  %s660_s3 = inlined_call_operand.hbm [shape: f32[8,128], index: 3, kind: output, shape index: {0}]   ;;  %s661_s4 = inlined_call_operand.hbm [shape: f32[8,128], index: 4, kind: output, shape index: {1}]  }
   0x1   :  { %11 = vsyncpa [#allocation6], 0 }
   0x2   :  { %12 = vsyncpa [#allocation4], 0 }
   0x3   :  { %13 = vsyncpa [#allocation9], 0  ;;  %s549_s15 = smov [#allocation2]   ;;  %s550_s17 = smov [#allocation5]  }
   0x4   :  { %s20_s16 = sshll.u32 %s549_s15, 4  ;;  %s29_s18 = sshll.u32 %s550_s17, 4  ;;  %s21_s16 = int_to_ptr.vmem [resolvable:$true] %s20_s16  ;;  %s583_s18 = int_to_ptr.vmem [resolvable:$true] %s29_s18 }
   0x5   :  { %s453_s21 = scalar_lea.hbm %s657_s0, 128 }
   0x6   :  { %p454_p0 = scmp.ne.s32.totalorder %s657_s0, %s453_s21  ;;  %p457_p1 = scmp.lt.u32.totalorder %s453_s21, %s657_s0 }
   0x8   :  { %p459_p2 = pnand %p457_p1, %p454_p0 }
   0xa   :  { %462 = shalt.err (!%p459_p2)
}
   0xb   :  { %s463_s26 = scalar_lea.vmem %s21_s16, 128  ;;  %p468_p4 = scmp.lt.s32.totalorder %s21_s16, %s21_s16 }
   0xc   :  { %p464_p3 = scmp.ne.s32.totalorder %s21_s16, %s463_s26  ;;  %p469_p5 = scmp.lt.s32.totalorder %s463_s26, %s463_s26 }
   0xe   :  { %p470_p6 = por %p469_p5, %p468_p4 }
  0x10   :  { %p471_p7 = pnand %p470_p6, %p464_p3 }
  0x12   :  { %474 = shalt.err (!%p471_p7)
}
  0x13   :  { %23 = dma.hbm_to_vmem [thread:$0]  %s657_s0, 128, %s21_s16, [#allocation3]  }
  0x14   :  { %s475_s5 = scalar_lea.hbm %s658_s1, 4096 }
  0x15   :  { %p476_p8 = scmp.ne.s32.totalorder %s658_s1, %s475_s5  ;;  %p479_p9 = scmp.lt.u32.totalorder %s475_s5, %s658_s1 }
  0x17   :  { %p481_p10 = pnand %p479_p9, %p476_p8 }
  0x19   :  { %484 = shalt.err (!%p481_p10)
}
  0x1a   :  { %s485_s10 = scalar_lea.vmem %s583_s18, 4096  ;;  %p490_p12 = scmp.lt.s32.totalorder %s583_s18, %s583_s18 }
  0x1b   :  { %p486_p11 = scmp.ne.s32.totalorder %s583_s18, %s485_s10  ;;  %p491_p13 = scmp.lt.s32.totalorder %s485_s10, %s485_s10 }
  0x1d   :  { %p492_p0 = por %p491_p13, %p490_p12 }
  0x1f   :  { %p493_p1 = pnand %p492_p0, %p486_p11 }
  0x21   :  { %496 = shalt.err (!%p493_p1)
}
  0x22   :  { %s551_s0 = smov 128   ;;  %s552_s11 = smov 8  }
  0x23   :  { %35 = dma.hbm_to_vmem [thread:$0]  %s658_s1, 4096, %s583_s18, [#allocation6], %s551_s0, %s551_s0, %s552_s11  }
  0x24   :  { %541 = dma.done.wait [#allocation3], 128  }
  0x25   :  { %542 = vsyncadd [#allocation3], 4294967168 }
  0x26   :  { %543 = dma.done.wait [#allocation6], 4096  }
  0x27   :  { %544 = vsyncadd [#allocation6], 4294963200  ;;  %v553_v0 = vmov 0.0|0.0   ;;  %vm554_vm0 = vmmov 0   ;;  %v555_v1 = vmov 0.0   ;;  %v52_v2 = vld [vmem:[#allocation5] sm:$0xff] }
  0x28   :  { %392 = vmatprep.subr.bf16.mxu0 %v553_v0  ;;  %416 = vmatprep.subr.bf16.mxu1 %v553_v0  ;;  %v53_v3 = vld [vmem:[#allocation5 + $0x8] sm:$0xff]  ;;  %v54_v4 = vld [vmem:[#allocation5 + $0x10] sm:$0xff]  ;;  %v55_v6 = vld [vmem:[#allocation5 + $0x18] sm:$0xff]  ;;  %s556_s15 = smov [#allocation8]  }
  0x29   :  { %354 = vmatprep.mubr.msk.f32.mxu0 %vm554_vm0, %v555_v1  ;;  %389 = vmatprep.mubr.msk.f32.mxu1 %vm554_vm0, %v555_v1  ;;  %v393_v5 = vpack.c.bf16 %v53_v3, %v52_v2  ;;  %v396_v7 = vpack.c.bf16 %v55_v6, %v54_v4  ;;  %v56_v8 = vld [vmem:[#allocation5 + $0x20] sm:$0xff]  ;;  %v57_v9 = vld [vmem:[#allocation5 + $0x28] sm:$0xff]  ;;  %v144_v13 = vld [vmem:[#allocation5 + $0x90] sm:$0xff]  ;;  %s273_s16 = sshll.u32 %s556_s15, 4  ;;  %s274_s16 = int_to_ptr.vmem [resolvable:$true] %s273_s16 }
  0x2a   :  { %v142_v10 = vld [vmem:[#allocation5 + $0x80] sm:$0xff]  ;;  %v143_v11 = vld [vmem:[#allocation5 + $0x88] sm:$0xff]  ;;  %v145_v14 = vld [vmem:[#allocation5 + $0x98] sm:$0xff]  ;;  %v399_v15 = vpack.c.bf16 %v57_v9, %v56_v8  ;;  %s497_s17 = scalar_lea.vmem %s274_s16, 128  ;;  %p502_p3 = scmp.lt.s32.totalorder %s274_s16, %s274_s16 }
  0x2b   :  { %394 = vmatpush3.bf16.msra.mxu0 %v393_v5  ;;  %v417_v12 = vpack.c.bf16 %v143_v11, %v142_v10  ;;  %v58_v16 = vld [vmem:[#allocation5 + $0x30] sm:$0xff]  ;;  %v59_v17 = vld [vmem:[#allocation5 + $0x38] sm:$0xff]  ;;  %v420_v18 = vpack.c.bf16 %v145_v14, %v144_v13  ;;  %v146_v19 = vld [vmem:[#allocation5 + $0xa0] sm:$0xff]  ;;  %p498_p2 = scmp.ne.s32.totalorder %s274_s16, %s497_s17  ;;  %p503_p4 = scmp.lt.s32.totalorder %s497_s17, %s497_s17 }
  0x2c   :  { %395 = vmatprep.subr.bf16.mxu0 %v553_v0  ;;  %v147_v20 = vld [vmem:[#allocation5 + $0xa8] sm:$0xff]  ;;  %v402_v21 = vpack.c.bf16 %v59_v17, %v58_v16  ;;  %v60_v22 = vld [vmem:[#allocation5 + $0x40] sm:$0xff]  ;;  %v148_v25 = vld [vmem:[#allocation5 + $0xb0] sm:$0xff] }
  0x2d   :  { %418 = vmatpush3.bf16.msra.mxu1 %v417_v12  ;;  %v61_v23 = vld [vmem:[#allocation5 + $0x48] sm:$0xff]  ;;  %v423_v24 = vpack.c.bf16 %v147_v20, %v146_v19  ;;  %v149_v26 = vld [vmem:[#allocation5 + $0xb8] sm:$0xff]  ;;  %v62_v28 = vld [vmem:[#allocation5 + $0x50] sm:$0xff]  ;;  %p504_p5 = por %p503_p4, %p502_p3 }
  0x2e   :  { %419 = vmatprep.subr.bf16.mxu1 %v553_v0  ;;  %v405_v27 = vpack.c.bf16 %v61_v23, %v60_v22  ;;  %v63_v29 = vld [vmem:[#allocation5 + $0x58] sm:$0xff]  ;;  %v426_v30 = vpack.c.bf16 %v149_v26, %v148_v25  ;;  %v150_v31 = vld [vmem:[#allocation5 + $0xc0] sm:$0xff]  ;;  %v151_v32 = vld [vmem:[#allocation5 + $0xc8] sm:$0xff] }
  0x2f   :  { %397 = vmatpush3.bf16.msra.mxu0 %v396_v7  ;;  %v408_v33 = vpack.c.bf16 %v63_v29, %v62_v28  ;;  %v64_v34 = vld [vmem:[#allocation5 + $0x60] sm:$0xff]  ;;  %v65_v35 = vld [vmem:[#allocation5 + $0x68] sm:$0xff]  ;;  %v429_v36 = vpack.c.bf16 %v151_v32, %v150_v31  ;;  %v152_v37 = vld [vmem:[#allocation5 + $0xd0] sm:$0xff]  ;;  %p505_p6 = pnand %p504_p5, %p498_p2 }
  0x30   :  { %398 = vmatprep.subr.bf16.mxu0 %v553_v0  ;;  %v153_v38 = vld [vmem:[#allocation5 + $0xd8] sm:$0xff]  ;;  %v411_v39 = vpack.c.bf16 %v65_v35, %v64_v34  ;;  %v66_v40 = vld [vmem:[#allocation5 + $0x70] sm:$0xff]  ;;  %v154_v43 = vld [vmem:[#allocation5 + $0xe0] sm:$0xff] }
  0x31   :  { %421 = vmatpush3.bf16.msra.mxu1 %v420_v18  ;;  %v67_v41 = vld [vmem:[#allocation5 + $0x78] sm:$0xff]  ;;  %v432_v42 = vpack.c.bf16 %v153_v38, %v152_v37  ;;  %v155_v44 = vld [vmem:[#allocation5 + $0xe8] sm:$0xff]  ;;  %v156_v47 = vld [vmem:[#allocation5 + $0xf0] sm:$0xff] }
  0x32   :  { %422 = vmatprep.subr.bf16.mxu1 %v553_v0  ;;  %v414_v45 = vpack.c.bf16 %v67_v41, %v66_v40  ;;  %v435_v46 = vpack.c.bf16 %v155_v44, %v154_v43  ;;  %v157_v48 = vld [vmem:[#allocation5 + $0xf8] sm:$0xff] }
  0x33   :  { %400 = vmatpush3.bf16.msra.mxu0 %v399_v15  ;;  %v50_v49 = vld [vmem:[#allocation2] sm:$0xff]  ;;  %v438_v50 = vpack.c.bf16 %v157_v48, %v156_v47 }
  0x34   :  { %401 = vmatprep.subr.bf16.mxu0 %v553_v0  ;;  %v287_v52 = vld [vmem:[%s659_s2] ss:$0 sm:$0xff] }
  0x35   :  { %424 = vmatpush3.bf16.msra.mxu1 %v423_v24 }
  0x36   :  { %425 = vmatprep.subr.bf16.mxu1 %v553_v0 }
  0x37   :  { %403 = vmatpush3.bf16.msra.mxu0 %v402_v21 }
  0x38   :  { %404 = vmatprep.subr.bf16.mxu0 %v553_v0 }
  0x39   :  { %427 = vmatpush3.bf16.msra.mxu1 %v426_v30 }
  0x3a   :  { %428 = vmatprep.subr.bf16.mxu1 %v553_v0 }
  0x3b   :  { %406 = vmatpush3.bf16.msra.mxu0 %v405_v27 }
  0x3c   :  { %407 = vmatprep.subr.bf16.mxu0 %v553_v0 }
  0x3d   :  { %430 = vmatpush3.bf16.msra.mxu1 %v429_v36 }
  0x3e   :  { %431 = vmatprep.subr.bf16.mxu1 %v553_v0 }
  0x3f   :  { %409 = vmatpush3.bf16.msra.mxu0 %v408_v33 }
  0x40   :  { %410 = vmatprep.subr.bf16.mxu0 %v553_v0 }
  0x41   :  { %433 = vmatpush3.bf16.msra.mxu1 %v432_v42 }
  0x42   :  { %434 = vmatprep.subr.bf16.mxu1 %v553_v0 }
  0x43   :  { %412 = vmatpush3.bf16.msra.mxu0 %v411_v39 }
  0x44   :  { %413 = vmatprep.subr.bf16.mxu0 %v553_v0 }
  0x45   :  { %436 = vmatpush3.bf16.msra.mxu1 %v435_v46 }
  0x46   :  { %437 = vmatprep.subr.bf16.mxu1 %v553_v0 }
  0x47   :  { %415 = vmatpush3.bf16.msra.mxu0 %v414_v45 }
  0x49   :  { %439 = vmatpush3.bf16.msra.mxu1 %v438_v50 }
  0x4a   :  { %355 = vmatmul.mubr.f32.vlgmr.msra.gmra.mrb[0].mxu0 %v50_v49 }
  0x4c   :  { %390 = vmatmul.mubr.f32.vlgmr.msra.gmra.mrb[0].mxu1 %v50_v49 }
 0x11d   :  { %v134_v51 = vpop.f32.mrb[0].mxu0 }
 0x11e   :  { %v356_v53 = vpop.f32.mrb[1].mxu0  ;;  %v241_v54 = vadd.f32 %v287_v52, %v134_v51 }
 0x11f   :  { %v224_v55 = vpop.f32.mrb[0].mxu1 }
 0x120   :  { %v242_v56 = vand.u32 2147483647, %v241_v54  ;;  %v391_v57 = vpop.f32.mrb[1].mxu1  ;;  %v254_v59 = vmax.f32 %v224_v55, -4.5 }
 0x122   :  { %v243_v58 = vsub.f32 0.0, %v242_v56  ;;  %v255_v61 = vmin.f32 %v254_v59, 0.0 }
 0x124   :  { %v244_v60 = vmul.f32 1.442695, %v243_v58  ;;  %256 = vst [vmem:[#allocation8] sm:$0xff] %v255_v61 }
 0x126   :  { %449 = vpow2.f32 %v244_v60 }
 0x127   :  { %508 = shalt.err (!%p505_p6)
}
 0x128   :  { %s509_s19 = scalar_lea.hbm %s661_s4, 128 }
 0x129   :  { %p510_p7 = scmp.ne.s32.totalorder %s661_s4, %s509_s19  ;;  %p513_p8 = scmp.lt.u32.totalorder %s509_s19, %s661_s4 }
 0x12b   :  { %p515_p9 = pnand %p513_p8, %p510_p7 }
 0x12d   :  { %518 = shalt.err (!%p515_p9)
}
 0x12e   :  { %276 = dma.vmem_to_hbm [thread:$0]  %s274_s16, 128, %s661_s4, [#allocation9]   ;;  %vm246_vm1 = vcmp.ge.f32.partialorder %v241_v54, 0.0 }
 0x12f   :  { %s557_s26 = smov [#allocation7]  }
 0x130   :  { %v450_v62 = vpop.eup %449  ;;  %s263_s27 = sshll.u32 %s557_s26, 4  ;;  %s264_s27 = int_to_ptr.vmem [resolvable:$true] %s263_s27 }
 0x131   :  { %v247_v63 = vadd.f32 1.0, %v450_v62  ;;  %s519_s28 = scalar_lea.vmem %s264_s27, 128  ;;  %p524_p11 = scmp.lt.s32.totalorder %s264_s27, %s264_s27 }
 0x132   :  { %p520_p10 = scmp.ne.s32.totalorder %s264_s27, %s519_s28  ;;  %p525_p12 = scmp.lt.s32.totalorder %s519_s28, %s519_s28 }
 0x133   :  { %451 = vrcp.f32 %v247_v63 }
 0x134   :  { %p526_p13 = por %p525_p12, %p524_p11 }
 0x136   :  { %p527_p0 = pnand %p526_p13, %p520_p10 }
 0x13d   :  { %v452_v0 = vpop.eup %451 }
 0x13e   :  { %v250_v1 = vmul.f32 %v452_v0, %v450_v62 }
 0x140   :  { %v251_v2 = vsel %vm246_vm1, %v452_v0, %v250_v1 }
 0x141   :  { %252 = vst [vmem:[#allocation7] sm:$0xff] %v251_v2 }
 0x142   :  { %530 = shalt.err (!%p527_p0)
}
 0x143   :  { %s531_s30 = scalar_lea.hbm %s660_s3, 128 }
 0x144   :  { %p532_p1 = scmp.ne.s32.totalorder %s660_s3, %s531_s30  ;;  %p535_p2 = scmp.lt.u32.totalorder %s531_s30, %s660_s3 }
 0x146   :  { %p537_p3 = pnand %p535_p2, %p532_p1 }
 0x148   :  { %540 = shalt.err (!%p537_p3)
}
 0x149   :  { %266 = dma.vmem_to_hbm [thread:$0]  %s264_s27, 128, %s660_s3, [#allocation4]  }
 0x14a   :  { %545 = dma.done.wait [#allocation4], 128  }
 0x14b   :  { %546 = vsyncadd [#allocation4], 4294967168 }
 0x14c   :  { %547 = dma.done.wait [#allocation9], 128  }
 0x14d   :  { %548 = vsyncadd [#allocation9], 4294967168 }
 0x14e   :  { %283 = vsyncpa [#allocation3], 1 }
 0x14f   :  { %284 = vsyncpa [#allocation6], 1 }
 0x150   :  { %285 = vsyncpa [#allocation4], 1 }
 0x151   :  { %286 = vsyncpa [#allocation9], 1 }

</bundles_post_ra>
